<compile_context>
chip_gen: v5e
topology: v5e:2x2
jax: 0.10.0
libtpu: 0.0.40
codegen_flags: <defaults>
</compile_context>

<pallas_src>
import jax
import jax.numpy as jnp
from jax.experimental import pallas as pl
from jax.experimental.pallas import tpu as pltpu


def _bigru_kernel(x_ref, len_ref, h0_ref,
                  wih_cat_ref, bih_cat_ref,
                  whh_f_ref, bhh_f_ref, whh_b_ref, bhh_b_ref,
                  out_ref, hid_ref,
                  hf_ref, hb_ref, outf_ref, outb_ref, gxf_ref, gxb_ref):
    """One program = one batch block: full bidirectional GRU over the sequence."""
    S, TB, H = x_ref.shape
    G = 3 * H

    # Hoisted once per program (not per timestep).
    wih_cat = wih_cat_ref[...]        # (H, 6H)  [fwd | bwd] input weights
    bih_cat = bih_cat_ref[...]        # (1, 6H)
    whh_f = whh_f_ref[...]            # (H, 3H)
    bhh_f = bhh_f_ref[...]            # (1, 3H)
    whh_b = whh_b_ref[...]            # (H, 3H)
    bhh_b = bhh_b_ref[...]            # (1, 3H)
    lengths = len_ref[...]            # (TB, 1) int32

    # ---- Phase 1: input projections for both directions (wide MXU matmuls) ----
    @pl.loop(0, S)
    def _(s):
        g = jnp.dot(x_ref[s], wih_cat,
                    preferred_element_type=jnp.float32) + bih_cat   # (TB, 6H)
        gxf_ref[s] = g[:, :G]
        gxb_ref[s] = g[:, G:]

    # Initial hidden states (PyTorch: zeros when hidden=None, else the given hidden).
    hf_ref[...] = h0_ref[0]
    hb_ref[...] = h0_ref[1]

    def gru_cell(gx, h, whh, bhh):
        # PyTorch GRU gate order: r, z, n ;  b_hn stays inside the r * (.) term.
        gh = jnp.dot(h, whh, preferred_element_type=jnp.float32) + bhh   # (TB, 3H)
        r = 1.0 / (1.0 + jnp.exp(-(gx[:, :H] + gh[:, :H])))
        z = 1.0 / (1.0 + jnp.exp(-(gx[:, H:2 * H] + gh[:, H:2 * H])))
        n = jnp.tanh(gx[:, 2 * H:] + r * gh[:, 2 * H:])
        return (1.0 - z) * n + z * h

    # ---- Phase 2: sequential recurrence.  Forward runs time t, backward runs
    # time S-1-t in the same iteration (independent chains -> good VLIW overlap).
    # Masking reproduces packed-sequence semantics exactly: steps with t >= len[b]
    # neither update the hidden state nor produce output (pad_packed pads with 0).
    @pl.loop(0, S)
    def _(t):
        # forward direction, time t
        m_f = (t < lengths).astype(jnp.float32)           # (TB, 1)
        h_f = hf_ref[...]
        hn_f = gru_cell(gxf_ref[t], h_f, whh_f, bhh_f)
        hf_ref[...] = m_f * hn_f + (1.0 - m_f) * h_f
        outf_ref[t] = m_f * hn_f

        # backward direction, time S-1-t
        tb = S - 1 - t
        m_b = (tb < lengths).astype(jnp.float32)
        h_b = hb_ref[...]
        hn_b = gru_cell(gxb_ref[tb], h_b, whh_b, bhh_b)
        hb_ref[...] = m_b * hn_b + (1.0 - m_b) * h_b
        outb_ref[tb] = m_b * hn_b

    # outputs[:, :, :H] + outputs[:, :, H:]  ==  forward half + backward half.
    out_ref[...] = outf_ref[...] + outb_ref[...]
    hid_ref[0] = hf_ref[...]
    hid_ref[1] = hb_ref[...]


class EncoderRNNPallas:
    """Pallas equivalent of the PyTorch EncoderRNN (synthetic GRU parameters)."""

    def __init__(self, hidden_size, embedding, n_layers=1, dropout=0.0, *, key):
        if n_layers != 1:
            # TODO(synk): multi-layer bidirectional GRU (2H inputs for layers > 0) not implemented.
            raise NotImplementedError("EncoderRNNPallas supports n_layers=1 (PyTorch default).")
        self.n_layers = n_layers
        self.hidden_size = hidden_size
        self.embedding = jnp.asarray(embedding, jnp.float32)        # (V, H)
        H = hidden_size
        bound = 1.0 / (H ** 0.5)
        ks = jax.random.split(key, 8)

        def u(k, shape):
            return jax.random.uniform(k, shape, jnp.float32, -bound, bound)

        # PyTorch parameter layout: weight_ih/hh (3H, H), bias_ih/hh (3H,), per direction.
        w_ih_f, w_hh_f = u(ks[0], (3 * H, H)), u(ks[1], (3 * H, H))
        b_ih_f, b_hh_f = u(ks[2], (3 * H,)), u(ks[3], (3 * H,))
        w_ih_b, w_hh_b = u(ks[4], (3 * H, H)), u(ks[5], (3 * H, H))
        b_ih_b, b_hh_b = u(ks[6], (3 * H,)), u(ks[7], (3 * H,))

        # Pre-transpose / pack ONCE here (no per-call HBM transposes in the wrapper).
        self.wih_f_t = w_ih_f.T                                    # (H, 3H)
        self.whh_f_t = w_hh_f.T
        self.wih_b_t = w_ih_b.T
        self.whh_b_t = w_hh_b.T
        self.bih_f = b_ih_f[None, :]                               # (1, 3H)
        self.bhh_f = b_hh_f[None, :]
        self.bih_b = b_ih_b[None, :]
        self.bhh_b = b_hh_b[None, :]
        self.wih_cat = jnp.concatenate([self.wih_f_t, self.wih_b_t], axis=1)   # (H, 6H)
        self.bih_cat = jnp.concatenate([self.bih_f, self.bih_b], axis=1)       # (1, 6H)

    def __call__(self, input_seq, input_lengths, hidden=None):
        # input_seq: (S, B) int32 token ids, input_lengths: (B,) ints (seq-major like PyTorch).
        S, B = input_seq.shape
        H = self.hidden_size
        G = 3 * H

        # TODO(synk): the nn.Embedding gather is data-dependent; it is done by XLA here
        # (jnp.take) rather than inside the Pallas kernel.
        embedded = jnp.take(self.embedding, input_seq, axis=0)      # (S, B, H)

        if hidden is None:
            hidden = jnp.zeros((2, B, H), jnp.float32)
        lengths = jnp.asarray(input_lengths, jnp.int32).reshape(B, 1)

        # Batch blocking: TB rows per program (fills sublanes, amortizes grid overhead,
        # and gives >1 parallel program on v7x when B is large).
        TB = B if B <= 8 else 8
        Bp = ((B + TB - 1) // TB) * TB
        if Bp != B:
            pad = Bp - B
            embedded = jnp.pad(embedded, ((0, 0), (0, pad), (0, 0)))
            hidden = jnp.pad(hidden, ((0, 0), (0, pad), (0, 0)))
            lengths = jnp.pad(lengths, ((0, pad), (0, 0)))   # length 0 => fully masked rows
        nb = Bp // TB

        grid_spec = pltpu.PrefetchScalarGridSpec(
            num_scalar_prefetch=0,
            grid=(nb,),
            in_specs=[
                pl.BlockSpec((S, TB, H), lambda i: (0, i, 0)),       # embedded
                pl.BlockSpec((TB, 1), lambda i: (i, 0)),             # lengths
                pl.BlockSpec((2, TB, H), lambda i: (0, i, 0)),       # initial hidden
                pl.BlockSpec((H, 2 * G), lambda i: (0, 0)),          # W_ih fwd|bwd (transposed)
                pl.BlockSpec((1, 2 * G), lambda i: (0, 0)),          # b_ih fwd|bwd
                pl.BlockSpec((H, G), lambda i: (0, 0)),              # W_hh fwd (transposed)
                pl.BlockSpec((1, G), lambda i: (0, 0)),              # b_hh fwd
                pl.BlockSpec((H, G), lambda i: (0, 0)),              # W_hh bwd (transposed)
                pl.BlockSpec((1, G), lambda i: (0, 0)),              # b_hh bwd
            ],
            out_specs=[
                pl.BlockSpec((S, TB, H), lambda i: (0, i, 0)),       # outputs (fwd + bwd)
                pl.BlockSpec((2, TB, H), lambda i: (0, i, 0)),       # final hidden
            ],
            scratch_shapes=[
                pltpu.VMEM((TB, H), jnp.float32),                    # h_fwd
                pltpu.VMEM((TB, H), jnp.float32),                    # h_bwd
                pltpu.VMEM((S, TB, H), jnp.float32),                 # out_fwd
                pltpu.VMEM((S, TB, H), jnp.float32),                 # out_bwd
                pltpu.VMEM((S, TB, G), jnp.float32),                 # gx_fwd
                pltpu.VMEM((S, TB, G), jnp.float32),                 # gx_bwd
            ],
        )

        outputs, hid = pl.pallas_call(
            _bigru_kernel,
            out_shape=(jax.ShapeDtypeStruct((S, Bp, H), jnp.float32),
                       jax.ShapeDtypeStruct((2, Bp, H), jnp.float32)),
            grid_spec=grid_spec,
            compiler_params=pltpu.CompilerParams(
                dimension_semantics=("parallel",)),
        )(embedded, lengths, hidden, self.wih_cat, self.bih_cat,
          self.whh_f_t, self.bhh_f, self.whh_b_t, self.bhh_b)

        if Bp != B:
            outputs = outputs[:, :B]
            hid = hid[:, :B]
        return outputs, hid


def encoder_rnn_reference(mod, input_seq, input_lengths, hidden=None):
    """Pure-JAX reference mirroring the PyTorch forward (packed bi-GRU via masking)."""
    H = mod.hidden_size
    emb = jnp.take(mod.embedding, input_seq, axis=0)                # (S, B, H)
    S, B, _ = emb.shape
    if hidden is None:
        hidden = jnp.zeros((2, B, H), jnp.float32)
    lengths = jnp.asarray(input_lengths, jnp.int32)
    mask = (jnp.arange(S)[:, None] < lengths[None, :]).astype(jnp.float32)[:, :, None]  # (S,B,1)
    hp = jax.lax.Precision.HIGHEST

    def run(wih_t, bih, whh_t, bhh, h0, reverse):
        h = h0
        outs = [None] * S
        order = range(S - 1, -1, -1) if reverse else range(S)
        for t in order:
            gx = jnp.dot(emb[t], wih_t, precision=hp) + bih
            gh = jnp.dot(h, whh_t, precision=hp) + bhh
            r = 1.0 / (1.0 + jnp.exp(-(gx[:, :H] + gh[:, :H])))
            z = 1.0 / (1.0 + jnp.exp(-(gx[:, H:2 * H] + gh[:, H:2 * H])))
            n = jnp.tanh(gx[:, 2 * H:] + r * gh[:, 2 * H:])
            hn = (1.0 - z) * n + z * h
            m = mask[t]
            h = m * hn + (1.0 - m) * h
            outs[t] = m * hn
        return jnp.stack(outs, axis=0), h

    out_f, h_f = run(mod.wih_f_t, mod.bih_f, mod.whh_f_t, mod.bhh_f, hidden[0], False)
    out_b, h_b = run(mod.wih_b_t, mod.bih_b, mod.whh_b_t, mod.bhh_b, hidden[1], True)
    return out_f + out_b, jnp.stack([h_f, h_b], axis=0)


if __name__ == "__main__":
    S, B, H, V = 8, 2, 32, 40    # seq=8, batch=2, hidden=32, vocab=40

    key = jax.random.PRNGKey(0)
    k_emb, k_seq, k_gru = jax.random.split(key, 3)
    embedding = jax.random.normal(k_emb, (V, H), jnp.float32)
    input_seq = jax.random.randint(k_seq, (S, B), 0, V, jnp.int32)
    input_lengths = jnp.array([8, 5], jnp.int32)   # sorted descending, as pack_padded_sequence expects

    enc = EncoderRNNPallas(H, embedding, n_layers=1, key=k_gru)
    outputs, hid = enc(input_seq, input_lengths)
    outputs = jax.block_until_ready(outputs)
    hid = jax.block_until_ready(hid)

    ref_out, ref_hid = encoder_rnn_reference(enc, input_seq, input_lengths)
    assert outputs.shape == (S, B, H), outputs.shape
    assert hid.shape == (2, B, H), hid.shape
    err_o = float(jnp.max(jnp.abs(outputs - ref_out)))
    err_h = float(jnp.max(jnp.abs(hid - ref_hid)))
    assert jnp.allclose(outputs, ref_out, rtol=2e-4, atol=2e-4), f"outputs mismatch: {err_o}"
    assert jnp.allclose(hid, ref_hid, rtol=2e-4, atol=2e-4), f"hidden mismatch: {err_h}"

    print("KERNEL_OK")
</pallas_src>

<mosaic_0001>
module attributes {stable_mosaic.version = 11 : i64} {
  func.func @_bigru_kernel(%arg0: i32, %arg1: memref<8x2x32xf32, #tpu.memory_space<vmem>>, %arg2: memref<2x1xi32, #tpu.memory_space<vmem>>, %arg3: memref<2x2x32xf32, #tpu.memory_space<vmem>>, %arg4: memref<32x192xf32, #tpu.memory_space<vmem>>, %arg5: memref<1x192xf32, #tpu.memory_space<vmem>>, %arg6: memref<32x96xf32, #tpu.memory_space<vmem>>, %arg7: memref<1x96xf32, #tpu.memory_space<vmem>>, %arg8: memref<32x96xf32, #tpu.memory_space<vmem>>, %arg9: memref<1x96xf32, #tpu.memory_space<vmem>>, %arg10: memref<8x2x32xf32, #tpu.memory_space<vmem>>, %arg11: memref<2x2x32xf32, #tpu.memory_space<vmem>>, %arg12: memref<2x32xf32, #tpu.memory_space<vmem>>, %arg13: memref<2x32xf32, #tpu.memory_space<vmem>>, %arg14: memref<8x2x32xf32, #tpu.memory_space<vmem>>, %arg15: memref<8x2x32xf32, #tpu.memory_space<vmem>>, %arg16: memref<8x2x96xf32, #tpu.memory_space<vmem>>, %arg17: memref<8x2x96xf32, #tpu.memory_space<vmem>>) attributes {dimension_semantics = [#tpu.dimension_semantics<parallel>], iteration_bounds = array<i64: 1>, scalar_prefetch = 0 : i64, scratch_operands = 6 : i64, tpu.core_type = #tpu.core_type<tc>, window_params = [{transform_indices = @transform_0, window_bounds = array<i64: 8, 2, 32>}, {transform_indices = @transform_1, window_bounds = array<i64: 2, 1>}, {transform_indices = @transform_2, window_bounds = array<i64: 2, 2, 32>}, {pipeline_mode = #tpu.pipeline_mode<synchronous>, transform_indices = @transform_3, window_bounds = array<i64: 32, 192>}, {pipeline_mode = #tpu.pipeline_mode<synchronous>, transform_indices = @transform_4, window_bounds = array<i64: 1, 192>}, {pipeline_mode = #tpu.pipeline_mode<synchronous>, transform_indices = @transform_5, window_bounds = array<i64: 32, 96>}, {pipeline_mode = #tpu.pipeline_mode<synchronous>, transform_indices = @transform_6, window_bounds = array<i64: 1, 96>}, {pipeline_mode = #tpu.pipeline_mode<synchronous>, transform_indices = @transform_7, window_bounds = array<i64: 32, 96>}, {pipeline_mode = #tpu.pipeline_mode<synchronous>, transform_indices = @transform_8, window_bounds = array<i64: 1, 96>}, {transform_indices = @transform_9, window_bounds = array<i64: 8, 2, 32>}, {transform_indices = @transform_10, window_bounds = array<i64: 2, 2, 32>}]} {
    %c0 = arith.constant 0 : index
    %c0_0 = arith.constant 0 : index
    %0 = vector.load %arg4[%c0, %c0_0] : memref<32x192xf32, #tpu.memory_space<vmem>>, vector<32x192xf32>
    %c0_1 = arith.constant 0 : index
    %c0_2 = arith.constant 0 : index
    %1 = vector.load %arg5[%c0_1, %c0_2] : memref<1x192xf32, #tpu.memory_space<vmem>>, vector<1x192xf32>
    %c0_3 = arith.constant 0 : index
    %c0_4 = arith.constant 0 : index
    %2 = vector.load %arg6[%c0_3, %c0_4] : memref<32x96xf32, #tpu.memory_space<vmem>>, vector<32x96xf32>
    %c0_5 = arith.constant 0 : index
    %c0_6 = arith.constant 0 : index
    %3 = vector.load %arg7[%c0_5, %c0_6] : memref<1x96xf32, #tpu.memory_space<vmem>>, vector<1x96xf32>
    %c0_7 = arith.constant 0 : index
    %c0_8 = arith.constant 0 : index
    %4 = vector.load %arg8[%c0_7, %c0_8] : memref<32x96xf32, #tpu.memory_space<vmem>>, vector<32x96xf32>
    %c0_9 = arith.constant 0 : index
    %c0_10 = arith.constant 0 : index
    %5 = vector.load %arg9[%c0_9, %c0_10] : memref<1x96xf32, #tpu.memory_space<vmem>>, vector<1x96xf32>
    %c0_11 = arith.constant 0 : index
    %c0_12 = arith.constant 0 : index
    %6 = vector.load %arg2[%c0_11, %c0_12] : memref<2x1xi32, #tpu.memory_space<vmem>>, vector<2x1xi32>
    %c0_i32 = arith.constant 0 : i32
    %c8_i32 = arith.constant 8 : i32
    %7 = arith.addi %c0_i32, %c8_i32 : i32
    %c1_i32 = arith.constant 1 : i32
    scf.for %arg18 = %c0_i32 to %7 step %c1_i32  : i32 {
      %c1_i32_46 = arith.constant 1 : i32
      %27 = arith.muli %arg18, %c1_i32_46 : i32
      %c0_i32_47 = arith.constant 0 : i32
      %28 = arith.addi %c0_i32_47, %27 : i32
      %29 = arith.index_cast %28 : i32 to index
      %c0_48 = arith.constant 0 : index
      %c0_49 = arith.constant 0 : index
      %30 = vector.load %arg1[%29, %c0_48, %c0_49] : memref<8x2x32xf32, #tpu.memory_space<vmem>>, vector<1x2x32xf32>
      %31 = vector.shape_cast %30 : vector<1x2x32xf32> to vector<2x32xf32>
      %cst = arith.constant dense<0.000000e+00> : vector<2x192xf32>
      %32 = tpu.matmul %31, %0, %cst {dimension_numbers = #tpu.dot_dimension_numbers<[1], [0], [0], [1], [0, 0, 1, 1], [], []>} : vector<2x32xf32>, vector<32x192xf32>, vector<2x192xf32> -> vector<2x192xf32>
      %33 = vector.broadcast %1 : vector<1x192xf32> to vector<2x192xf32>
      %34 = arith.addf %32, %33 : vector<2x192xf32>
      %35 = vector.extract_strided_slice %34 {offsets = [0, 0], sizes = [2, 96], strides = [1, 1]} : vector<2x192xf32> to vector<2x96xf32>
      %36 = arith.index_cast %28 : i32 to index
      %c0_50 = arith.constant 0 : index
      %c0_51 = arith.constant 0 : index
      %37 = vector.load %arg16[%36, %c0_50, %c0_51] : memref<8x2x96xf32, #tpu.memory_space<vmem>>, vector<1x2x96xf32>
      %38 = vector.shape_cast %37 : vector<1x2x96xf32> to vector<2x96xf32>
      %39 = vector.shape_cast %35 : vector<2x96xf32> to vector<1x2x96xf32>
      tpu.vector_store %arg16[%36, %c0_50, %c0_51], %39 {strides = array<i32>} : memref<8x2x96xf32, #tpu.memory_space<vmem>>, vector<1x2x96xf32>,
      %40 = vector.extract_strided_slice %34 {offsets = [0, 96], sizes = [2, 96], strides = [1, 1]} : vector<2x192xf32> to vector<2x96xf32>
      %41 = arith.index_cast %28 : i32 to index
      %c0_52 = arith.constant 0 : index
      %c0_53 = arith.constant 0 : index
      %42 = vector.load %arg17[%41, %c0_52, %c0_53] : memref<8x2x96xf32, #tpu.memory_space<vmem>>, vector<1x2x96xf32>
      %43 = vector.shape_cast %42 : vector<1x2x96xf32> to vector<2x96xf32>
      %44 = vector.shape_cast %40 : vector<2x96xf32> to vector<1x2x96xf32>
      tpu.vector_store %arg17[%41, %c0_52, %c0_53], %44 {strides = array<i32>} : memref<8x2x96xf32, #tpu.memory_space<vmem>>, vector<1x2x96xf32>,
    }
    %c8_i32_13 = arith.constant 8 : i32
    %c0_14 = arith.constant 0 : index
    %c0_15 = arith.constant 0 : index
    %c0_16 = arith.constant 0 : index
    %8 = vector.load %arg3[%c0_14, %c0_15, %c0_16] : memref<2x2x32xf32, #tpu.memory_space<vmem>>, vector<1x2x32xf32>
    %9 = vector.shape_cast %8 : vector<1x2x32xf32> to vector<2x32xf32>
    %c0_17 = arith.constant 0 : index
    %c0_18 = arith.constant 0 : index
    %10 = vector.load %arg12[%c0_17, %c0_18] : memref<2x32xf32, #tpu.memory_space<vmem>>, vector<2x32xf32>
    tpu.vector_store %arg12[%c0_17, %c0_18], %9 {strides = array<i32>} : memref<2x32xf32, #tpu.memory_space<vmem>>, vector<2x32xf32>,
    %c1 = arith.constant 1 : index
    %c0_19 = arith.constant 0 : index
    %c0_20 = arith.constant 0 : index
    %11 = vector.load %arg3[%c1, %c0_19, %c0_20] : memref<2x2x32xf32, #tpu.memory_space<vmem>>, vector<1x2x32xf32>
    %12 = vector.shape_cast %11 : vector<1x2x32xf32> to vector<2x32xf32>
    %c0_21 = arith.constant 0 : index
    %c0_22 = arith.constant 0 : index
    %13 = vector.load %arg13[%c0_21, %c0_22] : memref<2x32xf32, #tpu.memory_space<vmem>>, vector<2x32xf32>
    tpu.vector_store %arg13[%c0_21, %c0_22], %12 {strides = array<i32>} : memref<2x32xf32, #tpu.memory_space<vmem>>, vector<2x32xf32>,
    %c0_i32_23 = arith.constant 0 : i32
    %c8_i32_24 = arith.constant 8 : i32
    %14 = arith.addi %c0_i32_23, %c8_i32_24 : i32
    %c1_i32_25 = arith.constant 1 : i32
    scf.for %arg18 = %c0_i32_23 to %14 step %c1_i32_25  : i32 {
      %c1_i32_46 = arith.constant 1 : i32
      %27 = arith.muli %arg18, %c1_i32_46 : i32
      %c0_i32_47 = arith.constant 0 : i32
      %28 = arith.addi %c0_i32_47, %27 : i32
      %29 = vector.broadcast %28 : i32 to vector<2x1xi32>
      %30 = arith.cmpi slt, %29, %6 : vector<2x1xi32>
      %31 = arith.extui %30 : vector<2x1xi1> to vector<2x1xi32>
      %32 = arith.sitofp %31 : vector<2x1xi32> to vector<2x1xf32>
      %c0_48 = arith.constant 0 : index
      %c0_49 = arith.constant 0 : index
      %33 = vector.load %arg12[%c0_48, %c0_49] : memref<2x32xf32, #tpu.memory_space<vmem>>, vector<2x32xf32>
      %34 = arith.index_cast %28 : i32 to index
      %c0_50 = arith.constant 0 : index
      %c0_51 = arith.constant 0 : index
      %35 = vector.load %arg16[%34, %c0_50, %c0_51] : memref<8x2x96xf32, #tpu.memory_space<vmem>>, vector<1x2x96xf32>
      %36 = vector.shape_cast %35 : vector<1x2x96xf32> to vector<2x96xf32>
      %cst = arith.constant dense<0.000000e+00> : vector<2x96xf32>
      %37 = tpu.matmul %33, %2, %cst {dimension_numbers = #tpu.dot_dimension_numbers<[1], [0], [0], [1], [0, 0, 1, 1], [], []>} : vector<2x32xf32>, vector<32x96xf32>, vector<2x96xf32> -> vector<2x96xf32>
      %38 = vector.broadcast %3 : vector<1x96xf32> to vector<2x96xf32>
      %39 = arith.addf %37, %38 : vector<2x96xf32>
      %40 = vector.extract_strided_slice %36 {offsets = [0, 0], sizes = [2, 32], strides = [1, 1]} : vector<2x96xf32> to vector<2x32xf32>
      %41 = vector.extract_strided_slice %39 {offsets = [0, 0], sizes = [2, 32], strides = [1, 1]} : vector<2x96xf32> to vector<2x32xf32>
      %42 = arith.addf %40, %41 : vector<2x32xf32>
      %cst_52 = arith.constant 0.000000e+00 : f32
      %43 = vector.broadcast %cst_52 : f32 to vector<2x32xf32>
      %44 = arith.subf %43, %42 : vector<2x32xf32>
      %45 = math.exp %44 : vector<2x32xf32>
      %cst_53 = arith.constant 1.000000e+00 : f32
      %46 = vector.broadcast %cst_53 : f32 to vector<2x32xf32>
      %47 = arith.addf %46, %45 : vector<2x32xf32>
      %cst_54 = arith.constant 1.000000e+00 : f32
      %48 = vector.broadcast %cst_54 : f32 to vector<2x32xf32>
      %49 = arith.divf %48, %47 : vector<2x32xf32>
      %50 = vector.extract_strided_slice %36 {offsets = [0, 32], sizes = [2, 32], strides = [1, 1]} : vector<2x96xf32> to vector<2x32xf32>
      %51 = vector.extract_strided_slice %39 {offsets = [0, 32], sizes = [2, 32], strides = [1, 1]} : vector<2x96xf32> to vector<2x32xf32>
      %52 = arith.addf %50, %51 : vector<2x32xf32>
      %cst_55 = arith.constant 0.000000e+00 : f32
      %53 = vector.broadcast %cst_55 : f32 to vector<2x32xf32>
      %54 = arith.subf %53, %52 : vector<2x32xf32>
      %55 = math.exp %54 : vector<2x32xf32>
      %cst_56 = arith.constant 1.000000e+00 : f32
      %56 = vector.broadcast %cst_56 : f32 to vector<2x32xf32>
      %57 = arith.addf %56, %55 : vector<2x32xf32>
      %cst_57 = arith.constant 1.000000e+00 : f32
      %58 = vector.broadcast %cst_57 : f32 to vector<2x32xf32>
      %59 = arith.divf %58, %57 : vector<2x32xf32>
      %60 = vector.extract_strided_slice %36 {offsets = [0, 64], sizes = [2, 32], strides = [1, 1]} : vector<2x96xf32> to vector<2x32xf32>
      %61 = vector.extract_strided_slice %39 {offsets = [0, 64], sizes = [2, 32], strides = [1, 1]} : vector<2x96xf32> to vector<2x32xf32>
      %62 = arith.mulf %49, %61 : vector<2x32xf32>
      %63 = arith.addf %60, %62 : vector<2x32xf32>
      %64 = math.tanh %63 : vector<2x32xf32>
      %cst_58 = arith.constant 1.000000e+00 : f32
      %65 = vector.broadcast %cst_58 : f32 to vector<2x32xf32>
      %66 = arith.subf %65, %59 : vector<2x32xf32>
      %67 = arith.mulf %66, %64 : vector<2x32xf32>
      %68 = arith.mulf %59, %33 : vector<2x32xf32>
      %69 = arith.addf %67, %68 : vector<2x32xf32>
      %70 = vector.broadcast %32 : vector<2x1xf32> to vector<2x32xf32>
      %71 = arith.mulf %70, %69 : vector<2x32xf32>
      %cst_59 = arith.constant 1.000000e+00 : f32
      %72 = vector.broadcast %cst_59 : f32 to vector<2x1xf32>
      %73 = arith.subf %72, %32 : vector<2x1xf32>
      %74 = vector.broadcast %73 : vector<2x1xf32> to vector<2x32xf32>
      %75 = arith.mulf %74, %33 : vector<2x32xf32>
      %76 = arith.addf %71, %75 : vector<2x32xf32>
      %c0_60 = arith.constant 0 : index
      %c0_61 = arith.constant 0 : index
      %77 = vector.load %arg12[%c0_60, %c0_61] : memref<2x32xf32, #tpu.memory_space<vmem>>, vector<2x32xf32>
      tpu.vector_store %arg12[%c0_60, %c0_61], %76 {strides = array<i32>} : memref<2x32xf32, #tpu.memory_space<vmem>>, vector<2x32xf32>,
      %78 = vector.broadcast %32 : vector<2x1xf32> to vector<2x32xf32>
      %79 = arith.mulf %78, %69 : vector<2x32xf32>
      %80 = arith.index_cast %28 : i32 to index
      %c0_62 = arith.constant 0 : index
      %c0_63 = arith.constant 0 : index
      %81 = vector.load %arg14[%80, %c0_62, %c0_63] : memref<8x2x32xf32, #tpu.memory_space<vmem>>, vector<1x2x32xf32>
      %82 = vector.shape_cast %81 : vector<1x2x32xf32> to vector<2x32xf32>
      %83 = vector.shape_cast %79 : vector<2x32xf32> to vector<1x2x32xf32>
      tpu.vector_store %arg14[%80, %c0_62, %c0_63], %83 {strides = array<i32>} : memref<8x2x32xf32, #tpu.memory_space<vmem>>, vector<1x2x32xf32>,
      %c7_i32 = arith.constant 7 : i32
      %84 = arith.subi %c7_i32, %28 : i32
      %85 = vector.broadcast %84 : i32 to vector<2x1xi32>
      %86 = arith.cmpi slt, %85, %6 : vector<2x1xi32>
      %87 = arith.extui %86 : vector<2x1xi1> to vector<2x1xi32>
      %88 = arith.sitofp %87 : vector<2x1xi32> to vector<2x1xf32>
      %c0_64 = arith.constant 0 : index
      %c0_65 = arith.constant 0 : index
      %89 = vector.load %arg13[%c0_64, %c0_65] : memref<2x32xf32, #tpu.memory_space<vmem>>, vector<2x32xf32>
      %90 = arith.index_cast %84 : i32 to index
      %c0_66 = arith.constant 0 : index
      %c0_67 = arith.constant 0 : index
      %91 = vector.load %arg17[%90, %c0_66, %c0_67] : memref<8x2x96xf32, #tpu.memory_space<vmem>>, vector<1x2x96xf32>
      %92 = vector.shape_cast %91 : vector<1x2x96xf32> to vector<2x96xf32>
      %cst_68 = arith.constant dense<0.000000e+00> : vector<2x96xf32>
      %93 = tpu.matmul %89, %4, %cst_68 {dimension_numbers = #tpu.dot_dimension_numbers<[1], [0], [0], [1], [0, 0, 1, 1], [], []>} : vector<2x32xf32>, vector<32x96xf32>, vector<2x96xf32> -> vector<2x96xf32>
      %94 = vector.broadcast %5 : vector<1x96xf32> to vector<2x96xf32>
      %95 = arith.addf %93, %94 : vector<2x96xf32>
      %96 = vector.extract_strided_slice %92 {offsets = [0, 0], sizes = [2, 32], strides = [1, 1]} : vector<2x96xf32> to vector<2x32xf32>
      %97 = vector.extract_strided_slice %95 {offsets = [0, 0], sizes = [2, 32], strides = [1, 1]} : vector<2x96xf32> to vector<2x32xf32>
      %98 = arith.addf %96, %97 : vector<2x32xf32>
      %cst_69 = arith.constant 0.000000e+00 : f32
      %99 = vector.broadcast %cst_69 : f32 to vector<2x32xf32>
      %100 = arith.subf %99, %98 : vector<2x32xf32>
      %101 = math.exp %100 : vector<2x32xf32>
      %cst_70 = arith.constant 1.000000e+00 : f32
      %102 = vector.broadcast %cst_70 : f32 to vector<2x32xf32>
      %103 = arith.addf %102, %101 : vector<2x32xf32>
      %cst_71 = arith.constant 1.000000e+00 : f32
      %104 = vector.broadcast %cst_71 : f32 to vector<2x32xf32>
      %105 = arith.divf %104, %103 : vector<2x32xf32>
      %106 = vector.extract_strided_slice %92 {offsets = [0, 32], sizes = [2, 32], strides = [1, 1]} : vector<2x96xf32> to vector<2x32xf32>
      %107 = vector.extract_strided_slice %95 {offsets = [0, 32], sizes = [2, 32], strides = [1, 1]} : vector<2x96xf32> to vector<2x32xf32>
      %108 = arith.addf %106, %107 : vector<2x32xf32>
      %cst_72 = arith.constant 0.000000e+00 : f32
      %109 = vector.broadcast %cst_72 : f32 to vector<2x32xf32>
      %110 = arith.subf %109, %108 : vector<2x32xf32>
      %111 = math.exp %110 : vector<2x32xf32>
      %cst_73 = arith.constant 1.000000e+00 : f32
      %112 = vector.broadcast %cst_73 : f32 to vector<2x32xf32>
      %113 = arith.addf %112, %111 : vector<2x32xf32>
      %cst_74 = arith.constant 1.000000e+00 : f32
      %114 = vector.broadcast %cst_74 : f32 to vector<2x32xf32>
      %115 = arith.divf %114, %113 : vector<2x32xf32>
      %116 = vector.extract_strided_slice %92 {offsets = [0, 64], sizes = [2, 32], strides = [1, 1]} : vector<2x96xf32> to vector<2x32xf32>
      %117 = vector.extract_strided_slice %95 {offsets = [0, 64], sizes = [2, 32], strides = [1, 1]} : vector<2x96xf32> to vector<2x32xf32>
      %118 = arith.mulf %105, %117 : vector<2x32xf32>
      %119 = arith.addf %116, %118 : vector<2x32xf32>
      %120 = math.tanh %119 : vector<2x32xf32>
      %cst_75 = arith.constant 1.000000e+00 : f32
      %121 = vector.broadcast %cst_75 : f32 to vector<2x32xf32>
      %122 = arith.subf %121, %115 : vector<2x32xf32>
      %123 = arith.mulf %122, %120 : vector<2x32xf32>
      %124 = arith.mulf %115, %89 : vector<2x32xf32>
      %125 = arith.addf %123, %124 : vector<2x32xf32>
      %126 = vector.broadcast %88 : vector<2x1xf32> to vector<2x32xf32>
      %127 = arith.mulf %126, %125 : vector<2x32xf32>
      %cst_76 = arith.constant 1.000000e+00 : f32
      %128 = vector.broadcast %cst_76 : f32 to vector<2x1xf32>
      %129 = arith.subf %128, %88 : vector<2x1xf32>
      %130 = vector.broadcast %129 : vector<2x1xf32> to vector<2x32xf32>
      %131 = arith.mulf %130, %89 : vector<2x32xf32>
      %132 = arith.addf %127, %131 : vector<2x32xf32>
      %c0_77 = arith.constant 0 : index
      %c0_78 = arith.constant 0 : index
      %133 = vector.load %arg13[%c0_77, %c0_78] : memref<2x32xf32, #tpu.memory_space<vmem>>, vector<2x32xf32>
      tpu.vector_store %arg13[%c0_77, %c0_78], %132 {strides = array<i32>} : memref<2x32xf32, #tpu.memory_space<vmem>>, vector<2x32xf32>,
      %134 = vector.broadcast %88 : vector<2x1xf32> to vector<2x32xf32>
      %135 = arith.mulf %134, %125 : vector<2x32xf32>
      %136 = arith.index_cast %84 : i32 to index
      %c0_79 = arith.constant 0 : index
      %c0_80 = arith.constant 0 : index
      %137 = vector.load %arg15[%136, %c0_79, %c0_80] : memref<8x2x32xf32, #tpu.memory_space<vmem>>, vector<1x2x32xf32>
      %138 = vector.shape_cast %137 : vector<1x2x32xf32> to vector<2x32xf32>
      %139 = vector.shape_cast %135 : vector<2x32xf32> to vector<1x2x32xf32>
      tpu.vector_store %arg15[%136, %c0_79, %c0_80], %139 {strides = array<i32>} : memref<8x2x32xf32, #tpu.memory_space<vmem>>, vector<1x2x32xf32>,
    }
    %c8_i32_26 = arith.constant 8 : i32
    %c0_27 = arith.constant 0 : index
    %c0_28 = arith.constant 0 : index
    %c0_29 = arith.constant 0 : index
    %15 = vector.load %arg14[%c0_27, %c0_28, %c0_29] : memref<8x2x32xf32, #tpu.memory_space<vmem>>, vector<8x2x32xf32>
    %c0_30 = arith.constant 0 : index
    %c0_31 = arith.constant 0 : index
    %c0_32 = arith.constant 0 : index
    %16 = vector.load %arg15[%c0_30, %c0_31, %c0_32] : memref<8x2x32xf32, #tpu.memory_space<vmem>>, vector<8x2x32xf32>
    %17 = arith.addf %15, %16 : vector<8x2x32xf32>
    %c0_33 = arith.constant 0 : index
    %c0_34 = arith.constant 0 : index
    %c0_35 = arith.constant 0 : index
    %18 = vector.load %arg10[%c0_33, %c0_34, %c0_35] : memref<8x2x32xf32, #tpu.memory_space<vmem>>, vector<8x2x32xf32>
    tpu.vector_store %arg10[%c0_33, %c0_34, %c0_35], %17 {strides = array<i32>} : memref<8x2x32xf32, #tpu.memory_space<vmem>>, vector<8x2x32xf32>,
    %c0_36 = arith.constant 0 : index
    %c0_37 = arith.constant 0 : index
    %19 = vector.load %arg12[%c0_36, %c0_37] : memref<2x32xf32, #tpu.memory_space<vmem>>, vector<2x32xf32>
    %c0_38 = arith.constant 0 : index
    %c0_39 = arith.constant 0 : index
    %c0_40 = arith.constant 0 : index
    %20 = vector.load %arg11[%c0_38, %c0_39, %c0_40] : memref<2x2x32xf32, #tpu.memory_space<vmem>>, vector<1x2x32xf32>
    %21 = vector.shape_cast %20 : vector<1x2x32xf32> to vector<2x32xf32>
    %22 = vector.shape_cast %19 : vector<2x32xf32> to vector<1x2x32xf32>
    tpu.vector_store %arg11[%c0_38, %c0_39, %c0_40], %22 {strides = array<i32>} : memref<2x2x32xf32, #tpu.memory_space<vmem>>, vector<1x2x32xf32>,
    %c0_41 = arith.constant 0 : index
    %c0_42 = arith.constant 0 : index
    %23 = vector.load %arg13[%c0_41, %c0_42] : memref<2x32xf32, #tpu.memory_space<vmem>>, vector<2x32xf32>
    %c1_43 = arith.constant 1 : index
    %c0_44 = arith.constant 0 : index
    %c0_45 = arith.constant 0 : index
    %24 = vector.load %arg11[%c1_43, %c0_44, %c0_45] : memref<2x2x32xf32, #tpu.memory_space<vmem>>, vector<1x2x32xf32>
    %25 = vector.shape_cast %24 : vector<1x2x32xf32> to vector<2x32xf32>
    %26 = vector.shape_cast %23 : vector<2x32xf32> to vector<1x2x32xf32>
    tpu.vector_store %arg11[%c1_43, %c0_44, %c0_45], %26 {strides = array<i32>} : memref<2x2x32xf32, #tpu.memory_space<vmem>>, vector<1x2x32xf32>,
    return
  }
  func.func @transform_0(%arg0: i32) -> (i32, i32, i32) {
    %c0_i32 = arith.constant 0 : i32
    %c0_i32_0 = arith.constant 0 : i32
    %c0_i32_1 = arith.constant 0 : i32
    return %c0_i32, %arg0, %c0_i32_0 : i32, i32, i32
  }
  func.func @transform_1(%arg0: i32) -> (i32, i32) {
    %c0_i32 = arith.constant 0 : i32
    %c0_i32_0 = arith.constant 0 : i32
    return %arg0, %c0_i32 : i32, i32
  }
  func.func @transform_2(%arg0: i32) -> (i32, i32, i32) {
    %c0_i32 = arith.constant 0 : i32
    %c0_i32_0 = arith.constant 0 : i32
    %c0_i32_1 = arith.constant 0 : i32
    return %c0_i32, %arg0, %c0_i32_0 : i32, i32, i32
  }
  func.func @transform_3(%arg0: i32) -> (i32, i32) {
    %c0_i32 = arith.constant 0 : i32
    %c0_i32_0 = arith.constant 0 : i32
    %c0_i32_1 = arith.constant 0 : i32
    return %c0_i32, %c0_i32_0 : i32, i32
  }
  func.func @transform_4(%arg0: i32) -> (i32, i32) {
    %c0_i32 = arith.constant 0 : i32
    %c0_i32_0 = arith.constant 0 : i32
    %c0_i32_1 = arith.constant 0 : i32
    return %c0_i32, %c0_i32_0 : i32, i32
  }
  func.func @transform_5(%arg0: i32) -> (i32, i32) {
    %c0_i32 = arith.constant 0 : i32
    %c0_i32_0 = arith.constant 0 : i32
    %c0_i32_1 = arith.constant 0 : i32
    return %c0_i32, %c0_i32_0 : i32, i32
  }
  func.func @transform_6(%arg0: i32) -> (i32, i32) {
    %c0_i32 = arith.constant 0 : i32
    %c0_i32_0 = arith.constant 0 : i32
    %c0_i32_1 = arith.constant 0 : i32
    return %c0_i32, %c0_i32_0 : i32, i32
  }
  func.func @transform_7(%arg0: i32) -> (i32, i32) {
    %c0_i32 = arith.constant 0 : i32
    %c0_i32_0 = arith.constant 0 : i32
    %c0_i32_1 = arith.constant 0 : i32
    return %c0_i32, %c0_i32_0 : i32, i32
  }
  func.func @transform_8(%arg0: i32) -> (i32, i32) {
    %c0_i32 = arith.constant 0 : i32
    %c0_i32_0 = arith.constant 0 : i32
    %c0_i32_1 = arith.constant 0 : i32
    return %c0_i32, %c0_i32_0 : i32, i32
  }
  func.func @transform_9(%arg0: i32) -> (i32, i32, i32) {
    %c0_i32 = arith.constant 0 : i32
    %c0_i32_0 = arith.constant 0 : i32
    %c0_i32_1 = arith.constant 0 : i32
    return %c0_i32, %arg0, %c0_i32_0 : i32, i32, i32
  }
  func.func @transform_10(%arg0: i32) -> (i32, i32, i32) {
    %c0_i32 = arith.constant 0 : i32
    %c0_i32_0 = arith.constant 0 : i32
    %c0_i32_1 = arith.constant 0 : i32
    return %c0_i32, %arg0, %c0_i32_0 : i32, i32, i32
  }
}

</mosaic_0001>

<bundles_post_ra>
// kernel: tpu_custom_call.1
= control target key start
LH: loop header
LB: loop body
LE: loop exit
PB: predicated region body
PF: predicated region fallthrough
CT: control target
= control target key end

     0   :  { %16 = vsyncpa [#allocation9], 0  ;;  %s981_s0 = inlined_call_operand.hbm [shape: f32[8,2,32], index: 0, kind: input, shape index: {}]   ;;  %s982_s1 = inlined_call_operand.vmem [shape: s32[2,1], index: 1, kind: input, shape index: {}]   ;;  %s983_s2 = inlined_call_operand.vmem [shape: f32[2,2,32], index: 2, kind: input, shape index: {}]   ;;  %s984_s3 = inlined_call_operand.hbm [shape: f32[32,192], index: 3, kind: input, shape index: {}]   ;;  %s985_s4 = inlined_call_operand.vmem [shape: f32[1,192], index: 4, kind: input, shape index: {}]   ;;  %s986_s5 = inlined_call_operand.hbm [shape: f32[32,96], index: 5, kind: input, shape index: {}]   ;;  %s987_s6 = inlined_call_operand.vmem [shape: f32[1,96], index: 6, kind: input, shape index: {}]   ;;  %s988_s7 = inlined_call_operand.hbm [shape: f32[32,96], index: 7, kind: input, shape index: {}]   ;;  %s989_s8 = inlined_call_operand.vmem [shape: f32[1,96], index: 8, kind: input, shape index: {}]   ;;  %s990_s9 = inlined_call_operand.hbm [shape: f32[8,2,32], index: 9, kind: output, shape index: {0}]   ;;  %s991_s10 = inlined_call_operand.hbm [shape: f32[2,2,32], index: 10, kind: output, shape index: {1}]  }
   0x1   :  { %17 = vsyncpa [#allocation12], 0 }
   0x2   :  { %18 = vsyncpa [#allocation15], 0 }
   0x3   :  { %19 = vsyncpa [#allocation10], 0  ;;  %s42_s15 = sshll.u32 %s984_s3, 4  ;;  %s43_s15 = int_to_ptr.hbm [resolvable:$true] %s42_s15 }
   0x4   :  { %20 = vsyncpa [#allocation18], 0  ;;  %s748_s16 = smov [#allocation11]   ;;  %s25_s20 = sshll.u32 %s981_s0, 4  ;;  %s26_s20 = int_to_ptr.hbm [resolvable:$true] %s25_s20 }
   0x5   :  { %s44_s17 = sshll.u32 %s748_s16, 4  ;;  %s749_s21 = smov 256   ;;  %s45_s17 = int_to_ptr.vmem [resolvable:$true] %s44_s17 }
   0x6   :  { %s750_s22 = smov 16   ;;  %s751_s23 = smov [#allocation8]  }
   0x7   :  { %50 = dma.hbm_to_vmem [thread:$0]  %s43_s15, 1024, %s45_s17, [#allocation12], %s749_s21, %s749_s21, %s750_s22  }
   0x8   :  { %s27_s24 = sshll.u32 %s751_s23, 4  ;;  %s752_s25 = smov 32   ;;  %s28_s24 = int_to_ptr.vmem [resolvable:$true] %s27_s24 }
   0x9   :  { %s753_s26 = smov 2   ;;  %s57_s28 = sshll.u32 %s986_s5, 4  ;;  %s58_s28 = int_to_ptr.hbm [resolvable:$true] %s57_s28 }
   0xa   :  { %33 = dma.hbm_to_vmem [thread:$0]  %s26_s20, 256, %s28_s24, [#allocation9], %s752_s25, %s752_s25, %s753_s26  }
   0xb   :  { %s754_s29 = smov [#allocation13]   ;;  %s72_s12 = sshll.u32 %s988_s7, 4  ;;  %s73_s12 = int_to_ptr.hbm [resolvable:$true] %s72_s12 }
   0xc   :  { %s59_s0 = sshll.u32 %s754_s29, 4  ;;  %s755_s13 = smov 128   ;;  %s60_s0 = int_to_ptr.vmem [resolvable:$true] %s59_s0 }
   0xd   :  { %s756_s14 = smov 8   ;;  %s757_s15 = smov [#allocation14]  }
   0xe   :  { %65 = dma.hbm_to_vmem [thread:$0]  %s58_s28, 512, %s60_s0, [#allocation12], %s755_s13, %s755_s13, %s756_s14  }
   0xf   :  { %s74_s16 = sshll.u32 %s757_s15, 4  ;;  %s75_s16 = int_to_ptr.vmem [resolvable:$true] %s74_s16 }
  0x10   :  { %80 = dma.hbm_to_vmem [thread:$0]  %s73_s12, 512, %s75_s16, [#allocation15], %s755_s13, %s755_s13, %s756_s14  }
  0x11   :  { %730 = dma.done.wait [#allocation9], 256  }
  0x12   :  { %731 = vsyncadd [#allocation9], 4294967040 }
  0x13   :  { %732 = dma.done.wait [#allocation12], 1536  }
  0x14   :  { %733 = vsyncadd [#allocation12], 4294965760 }
  0x15   :  { %734 = dma.done.wait [#allocation15], 512  }
  0x16   :  { %735 = vsyncadd [#allocation15], 4294966784  ;;  %v99_v0 = vld [vmem:[#allocation11] sm:$0xff]  ;;  %v100_v1 = vld [vmem:[#allocation11 + $0x8] sm:$0xff] }
  0x17   :  { %v101_v2 = vld [vmem:[#allocation11 + $0x10] sm:$0xff]  ;;  %v102_v3 = vld [vmem:[#allocation11 + $0x18] sm:$0xff]  ;;  %v103_v4 = vld [vmem:[#allocation11 + $0x20] sm:$0xff] }
  0x18   :  { %v104_v5 = vld [vmem:[#allocation11 + $0x28] sm:$0xff]  ;;  %v105_v6 = vld [vmem:[#allocation11 + $0x30] sm:$0xff]  ;;  %v106_v7 = vld [vmem:[#allocation11 + $0x38] sm:$0xff] }
  0x19   :  { %v107_v8 = vld [vmem:[%s985_s4] sm:$0x3]  ;;  %v839_v9 = vld [vmem:[#allocation13] sm:$0xff]  ;;  %v843_v11 = vld [vmem:[#allocation13 + $0x10] sm:$0xff] }
  0x1a   :  { %v841_v10 = vld [vmem:[#allocation13 + $0x8] sm:$0xff]  ;;  %v845_v12 = vld [vmem:[#allocation13 + $0x18] sm:$0xff]  ;;  %v852_v14 = vld [vmem:[#allocation14] sm:$0xff] }
  0x1b   :  { %v850_v13 = vld [vmem:[%s987_s6] sm:$0x1]  ;;  %v856_v16 = vld [vmem:[#allocation14 + $0x10] sm:$0xff]  ;;  %v858_v17 = vld [vmem:[#allocation14 + $0x18] sm:$0xff]  ;;  %s870_s6 = smov 0  }
  0x1c   :  { %v854_v15 = vld [vmem:[#allocation14 + $0x8] sm:$0xff] }
  0x1d   :  { %v863_v18 = vld [vmem:[%s989_s8] sm:$0x1] }
  0x1e   :  { %v868_v19 = vld [vmem:[%s982_s1] sm:$0x3] }
  0x1f LB: > { %149 = vmatpush.msra.mxu0 %v105_v6  ;;  %169 = vmatpush.msra.mxu1 %v106_v7  ;;  %s514_s22 = sshll.u32 %s742_s6, 1  ;;  %vm133_vm0 = vcmask 261120   ;;  %v129_v21 = vperm.slane %v107_v8, 0  ;;  %vm178_vm1 = vcmask 779264   ;;  %s758_s23 = smov 32   ;;  %v130_v24 = vperm.slane %v107_v8, 1  ;;  %s742_s6 = sphi %s870_s6, %s124_s6  }
  0x20   : > { %s126_s8 = scalar_lea.vmem [#allocation8], %s514_s22  ;;  %s177_s1 = scalar_lea.vmem [#allocation6], %s514_s22 }
  0x21   : > { %150 = vmatpush.msra.mxu0 %v103_v4  ;;  %170 = vmatpush.msra.mxu1 %v104_v5  ;;  %v127_v20 = vld [vmem:[%s126_s8] sm:$0x3]  ;;  %s188_s24 = scalar_lea.vmem [#allocation7], %s514_s22  ;;  %s124_s6 = sadd.s32 1, %s742_s6  }
  0x22   : > { %p121_p0 = scmp.ge.s32.totalorder %s124_s6, 8  }
  0x23   : > { %151 = vmatpush.msra.mxu0 %v101_v2  ;;  %171 = vmatpush.msra.mxu1 %v102_v3  ;;  %v190_v30 = vld [vmem:[%s983_s2] sm:$0x3] (%p121_p0)  ;;  %vm191_vm2 = vcmask (%p121_p0), 254976   ;;  %v517_v31 = vld [vmem:[%s983_s2 + $0x2] sm:$0x3] (%p121_p0)  ;;  %s890_s0 = smov (%p121_p0), 0  }
  0x24   :  { %192 = vst.msk [vmem:[#allocation2] sm:$0x3] (%p121_p0), %vm191_vm2, %v190_v30 }
  0x25   : > { %152 = vmatpush.msra.mxu0 %v99_v0  ;;  %172 = vmatpush.msra.mxu1 %v100_v1  ;;  %195 = vst.msk [vmem:[#allocation3] sm:$0x3] (%p121_p0), %vm191_vm2, %v517_v31 }
  0x26   : > { %515 = vmatmul.msk.f32.vlgmr.msra.gmra.mxu0 %vm133_vm0, %v127_v20  ;;  %516 = vmatmul.msk.f32.vlgmr.msra.gmra.mxu1 %vm133_vm0, %v127_v20 }
  0xa3   : > { %v154_v22 = vpop.f32.mrf.mxu0  ;;  %v174_v25 = vpop.f32.mrf.mxu1 }
  0xa4   : > { %v155_v23 = vadd.f32 %v154_v22, %v129_v21  ;;  %v175_v26 = vadd.f32 %v174_v25, %v130_v24 }
  0xa6   : > { %179 = vst.msk [vmem:[%s177_s1] sm:$0x3] %vm178_vm1, %v155_v23  ;;  %182 = vrot.lane.b32.xlu0 %v155_v23, %s758_s23 }
  0xae   : > { %184 = vrot.lane.b32.xlu0 %v175_v26, %s758_s23 }
 0x118   : > { %v183_v27 = vpop.permute.xlu0 %182 }
 0x11e   :  { %123 = sbr.rel (!%p121_p0) target bundleno = 31 (0x1f), region = 103 }
 0x120   : > { %v185_v28 = vpop.permute.xlu0 %184 }
 0x121   : > { %v186_v29 = vsel %vm133_vm0, %v183_v27, %v185_v28 }
 0x122   : > { %189 = vst.msk [vmem:[%s188_s24] sm:$0x3] %vm178_vm1, %v186_v29 }
 0x123 LB: > { %229 = vmatpush.msra.mxu0 %v845_v12  ;;  %335 = vmatpush.msra.mxu1 %v858_v17  ;;  %v900_v32 = vld [vmem:[#allocation2] sm:$0x3]  ;;  %v903_v33 = vld [vmem:[#allocation3] sm:$0x3]  ;;  %v211_v34 = vperm.slane %v850_v13, 0  ;;  %s759_s2 = smov 64   ;;  %v202_v56 = vstv %s746_s0  ;;  %s746_s0 = sphi %s890_s0, %s201_s0  }
 0x124   : > { %v318_v37 = vperm.slane %v863_v18, 0  ;;  %s760_s30 = smov 32   ;;  %s519_s11 = sshll.u32 %s746_s0, 1  ;;  %v761_v58 = vmov 0   ;;  %vm203_vm3 = vcmp.lt.s32.totalorder %v202_v56, %v868_v19  ;;  %v762_v61 = vmov 0.0  }
 0x125   : > { %230 = vmatpush.msra.mxu0 %v843_v11  ;;  %336 = vmatpush.msra.mxu1 %v856_v16  ;;  %s308_s12 = ssub.s32 7, %s746_s0  ;;  %s208_s13 = scalar_lea.vmem [#allocation6], %s519_s11  ;;  %v518_v62 = vsel %vm203_vm3, 1.0, %v762_v61 }
 0x126   : > { %v921_v40 = vld [vmem:[%s208_s13] sm:$0x3]  ;;  %s923_s14 = sshll.u32 %s308_s12, 1  ;;  %v309_v57 = vstv %s308_s12  ;;  %558 = vset.pattern.permute.xlu2 %v761_v58  ;;  %559 = vset.pattern.permute.xlu1 %v761_v58  ;;  %v285_v63 = vsub.f32 1.0, %v518_v62  ;;  %s763_s16 = smov 96  }
 0x127   : > { %231 = vmatpush.msra.mxu0 %v841_v10  ;;  %337 = vmatpush.msra.mxu1 %v854_v15  ;;  %s315_s15 = scalar_lea.vmem [#allocation7], %s923_s14  ;;  %vm310_vm4 = vcmp.lt.s32.totalorder %v309_v57, %v868_v19  ;;  %s306_s5 = scalar_lea.vmem [#allocation4], %s519_s11 }
 0x128   : > { %565 = vset.pattern.permute.xlu0 %v761_v58  ;;  %288 = vperm.xlu2 %558, %v285_v63   ;;  %v521_v2 = vsel %vm310_vm4, 1.0, %v762_v61  ;;  %s412_s7 = scalar_lea.vmem [#allocation5], %s923_s14  ;;  %s201_s0 = sadd.s32 1, %s746_s0  }
 0x129   : > { %232 = vmatpush.msra.mxu0 %v839_v9  ;;  %338 = vmatpush.msra.mxu1 %v852_v14  ;;  %v927_v43 = vld [vmem:[%s315_s15] sm:$0x3]  ;;  %v391_v5 = vsub.f32 1.0, %v521_v2  ;;  %v560_v31 = vpack.i.bf16 %v521_v2, %v518_v62  ;;  %p198_p1 = scmp.ge.s32.totalorder %s201_s0, 8  }
 0x12a   : > { %520 = vmatmul.msk.f32.vlgmr.msra.gmra.mxu0 %vm133_vm0, %v900_v32  ;;  %523 = vmatmul.msk.f32.vlgmr.msra.gmra.mxu1 %vm133_vm0, %v903_v33  ;;  %s457_s4 = sshll.u32 (%p198_p1), %s990_s9, 4  ;;  %s764_s19 = smov (%p198_p1), [#allocation16]   ;;  %s458_s4 = int_to_ptr.hbm [resolvable:$true] %s457_s4 }
 0x12b   :  { %s455_s20 = sshll.u32 (%p198_p1), %s764_s19, 4  ;;  %s765_s21 = smov (%p198_p1), [#allocation17]   ;;  %s456_s20 = int_to_ptr.vmem [resolvable:$true] %s455_s20 }
 0x12c   :  { %s468_s6 = sshll.u32 (%p198_p1), %s765_s21, 4  ;;  %s470_s1 = sshll.u32 (%p198_p1), %s991_s10, 4  ;;  %s469_s6 = int_to_ptr.vmem [resolvable:$true] %s468_s6  ;;  %s471_s1 = int_to_ptr.hbm [resolvable:$true] %s470_s1 }
 0x130   : > { %394 = vperm.xlu2 %558, %v391_v5  }
 0x1a7   : > { %v234_v35 = vpop.f32.mrf.mxu0  ;;  %v340_v38 = vpop.f32.mrf.mxu1 }
 0x1a8   : > { %v235_v36 = vadd.f32 %v234_v35, %v211_v34  ;;  %v341_v39 = vadd.f32 %v340_v38, %v318_v37 }
 0x1aa   : > { %258 = vrot.lane.b32.xlu0 %v235_v36, %s759_s2  ;;  %v237_v41 = vadd.f32 %v235_v36, %v921_v40  ;;  %v343_v45 = vadd.f32 %v341_v39, %v927_v43  ;;  %v289_v36 = vpop.permute.xlu2 %288 }
 0x1ac   : > { %v238_v42 = vsub.f32 0.0, %v237_v41  ;;  %v344_v46 = vsub.f32 0.0, %v343_v45 }
 0x1ae   : > { %v239_v44 = vmul.f32 1.442695, %v238_v42  ;;  %v345_v47 = vmul.f32 1.442695, %v344_v46 }
 0x1b0   : > { %566 = vpow2.f32 %v239_v44 }
 0x1b1   : > { %568 = vpow2.f32 %v345_v47 }
 0x1b2   : > { %364 = vrot.lane.b32.xlu0 %v341_v39, %s759_s2  ;;  %v395_v41 = vpop.permute.xlu2 %394 }
 0x1b3   : > { %v397_v42 = vmul.f32 %v395_v41, %v903_v33 }
 0x1b6   : > { %v567_v48 = vpop.eup %566 }
 0x1b7   : > { %v241_v49 = vadd.f32 1.0, %v567_v48  ;;  %v569_v50 = vpop.eup %568 }
 0x1b8   : > { %v347_v51 = vadd.f32 1.0, %v569_v50 }
 0x1b9   : > { %570 = vrcp.f32 %v241_v49  ;;  %v253_v3 = vand.u32 2147483648, %v241_v49  ;;  %vm247_vm6 = vweird.f32 %v241_v49  ;;  %v251_v4 = vand.u32 2147483647, %v241_v49 }
 0x1ba   : > { %380 = vrot.lane.b32.xlu0 %v903_v33, %s760_s30  ;;  %572 = vrcp.f32 %v347_v51  ;;  %vm353_vm9 = vweird.f32 %v347_v51  ;;  %v359_v22 = vand.u32 2147483648, %v347_v51  ;;  %v357_v25 = vand.u32 2147483647, %v347_v51 }
 0x1bb   : > { %v254_v8 = vor.u32 1.1754944e-38, %v253_v3  ;;  %vm252_vm8 = vcmp.eq.f32.partialorder %v251_v4, 8.507059e+37 }
 0x1bc   : > { %v360_v26 = vor.u32 1.1754944e-38, %v359_v22  ;;  %vm358_vm12 = vcmp.eq.f32.partialorder %v357_v25, 8.507059e+37 }
 0x1bf   : > { %v571_v52 = vpop.eup %570 }
 0x1c0   : > { %v243_v53 = vmul.f32 %v571_v52, %v241_v49  ;;  %v573_v55 = vpop.eup %572  ;;  %vm248_vm5 = vweird.f32 %v571_v52 }
 0x1c1   : > { %v349_v60 = vmul.f32 %v573_v55, %v347_v51  ;;  %vm249_vm7 = vmor %vm247_vm6, %vm248_vm5  ;;  %vm354_vm10 = vweird.f32 %v573_v55 }
 0x1c2   : > { %v244_v54 = vsub.f32 1.0, %v243_v53  ;;  %vm355_vm11 = vmor %vm353_vm9, %vm354_vm10 }
 0x1c3   : > { %v350_v1 = vsub.f32 1.0, %v349_v60 }
 0x1c4   : > { %v245_v59 = vmul.f32 %v571_v52, %v244_v54 }
 0x1c5   : > { %v351_v7 = vmul.f32 %v573_v55, %v350_v1 }
 0x1c6   : > { %v246_v0 = vadd.f32 %v571_v52, %v245_v59 }
 0x1c7   : > { %v352_v24 = vadd.f32 %v573_v55, %v351_v7 }
 0x1c8   : > { %v250_v6 = vsel %vm249_vm7, %v571_v52, %v246_v0 }
 0x1c9   : > { %v255_v21 = vsel %vm252_vm8, %v254_v8, %v250_v6  ;;  %v356_v27 = vsel %vm355_vm11, %v573_v55, %v352_v24 }
 0x1ca   : > { %v361_v29 = vsel %vm358_vm12, %v360_v26, %v356_v27  ;;  %v268_v49 = vsub.f32 1.0, %v255_v21 }
 0x21c   : > { %v259_v20 = vpop.permute.xlu0 %258 }
 0x21d   : > { %v261_v23 = vmul.f32 %v259_v20, %v255_v21 }
 0x21f   : > { %263 = vrot.lane.b32.xlu1 %v261_v23, %s759_s2 }
 0x224   : > { %v365_v28 = vpop.permute.xlu0 %364 }
 0x225   : > { %v367_v30 = vmul.f32 %v365_v28, %v361_v29 }
 0x227   : > { %369 = vrot.lane.b32.xlu1 %v367_v30, %s759_s2 }
 0x22c   : > { %v381_v45 = vpop.permute.xlu0 %380 }
 0x22d   : > { %v383_v52 = vmul.f32 %v381_v45, %v361_v29 }
 0x22f   : > { %274 = vrot.lane.b32.xlu1 %v900_v32, %s760_s30 }
 0x237   : > { %561 = vperm.xlu1 %559, %v560_v31  }
 0x291   : > { %v264_v34 = vpop.permute.xlu1 %263 }
 0x292   : > { %v266_v35 = vadd.f32 %v264_v34, %v921_v40  ;;  %v291_v40 = vmul.f32 %v289_v36, %v900_v32 }
 0x294   : > { %574 = vtanh.f32 %v266_v35 }
 0x299   : > { %v370_v37 = vpop.permute.xlu1 %369 }
 0x29a   : > { %v575_v38 = vpop.eup %574  ;;  %v372_v39 = vadd.f32 %v370_v37, %v927_v43  ;;  %v374_v43 = vsub.f32 1.0, %v361_v29 }
 0x29b   : > { %270 = vrot.lane.b32.xlu0 %v575_v38, %s763_s16 }
 0x29c   : > { %576 = vtanh.f32 %v372_v39 }
 0x2a1   : > { %v275_v46 = vpop.permute.xlu1 %274 }
 0x2a2   : > { %v577_v44 = vpop.eup %576  ;;  %v277_v53 = vmul.f32 %v275_v46, %v255_v21 }
 0x2a3   : > { %376 = vrot.lane.b32.xlu2 %v577_v44, %s763_s16  ;;  %399 = vrot.lane.b32.xlu0 %v397_v42, %s760_s30 }
 0x2a9   : > { %v562_v50 = vpop.permute.xlu1 %561 }
 0x2aa   : > { %v563_v33 = vunpack.i.l.bf16 %v562_v50  ;;  %v564_v56 = vunpack.i.h.bf16 %v562_v50 }
 0x2ab   : > { %293 = vrot.lane.b32.xlu2 %v291_v40, %s760_s30 }
 0x2fd   : > { %v377_v47 = vpop.permute.xlu2 %376 }
 0x2fe   : > { %v379_v48 = vmul.f32 %v377_v47, %v374_v43 }
 0x300   : > { %v384_v55 = vadd.f32 %v383_v52, %v379_v48 }
 0x302   : > { %v390_v59 = vmul.f32 %v564_v56, %v384_v55 }
 0x305   : > { %v294_v32 = vpop.permute.xlu2 %293 }
 0x30d   : > { %v271_v51 = vpop.permute.xlu0 %270 }
 0x30e   : > { %v273_v54 = vmul.f32 %v271_v51, %v268_v49 }
 0x310   : > { %v278_v57 = vadd.f32 %v277_v53, %v273_v54 }
 0x312   : > { %v284_v58 = vmul.f32 %v563_v33, %v278_v57 }
 0x314   : > { %303 = vrot.lane.b32.xlu2 %v284_v58, %s763_s16  ;;  %v296_v60 = vadd.f32 %v294_v32, %v284_v58 }
 0x315   : > { %v400_v61 = vpop.permute.xlu0 %399 }
 0x316   : > { %v402_v62 = vadd.f32 %v400_v61, %v390_v59  ;;  %298 = vrot.lane.b32.xlu1 %v296_v60, %s763_s16 }
 0x318   : > { %404 = vrot.lane.b32.xlu0 %v402_v62, %s763_s16 }
 0x31e   : > { %409 = vrot.lane.b32.xlu1 %v390_v59, %s763_s16 }
 0x36e   : > { %v304_v63 = vpop.permute.xlu2 %303 }
 0x36f   : > { %307 = vst.msk [vmem:[%s306_s5] sm:$0x3] %vm191_vm2, %v304_v63 }
 0x376   :  { %v414_v3 = vld [vmem:[#allocation4] sm:$0x3] (%p198_p1)  ;;  %v415_v5 = vld [vmem:[#allocation4 + $0x2] sm:$0x3] (%p198_p1)  ;;  %v416_v8 = vld [vmem:[#allocation4 + $0x4] sm:$0x3] (%p198_p1) }
 0x377   :  { %v417_v23 = vld [vmem:[#allocation4 + $0x6] sm:$0x3] (%p198_p1)  ;;  %v418_v25 = vld [vmem:[#allocation4 + $0x8] sm:$0x3] (%p198_p1)  ;;  %v419_v28 = vld [vmem:[#allocation4 + $0xa] sm:$0x3] (%p198_p1) }
 0x378   :  { %v420_v10 = vld [vmem:[#allocation4 + $0xc] sm:$0x3] (%p198_p1)  ;;  %v421_v13 = vld [vmem:[#allocation4 + $0xe] sm:$0x3] (%p198_p1) }
 0x388   : > { %v299_v0 = vpop.permute.xlu1 %298 }
 0x389   : > { %301 = vst.msk [vmem:[#allocation2] sm:$0x3] %vm191_vm2, %v299_v0 }
 0x38a   : > { %v405_v1 = vpop.permute.xlu0 %404 }
 0x38b   : > { %407 = vst.msk [vmem:[#allocation3] sm:$0x3] %vm191_vm2, %v405_v1 }
 0x390   : > { %v410_v2 = vpop.permute.xlu1 %409  ;;  %200 = sbr.rel (!%p198_p1) target bundleno = 291 (0x123), region = 114  ;;  %v446_v17 = vld [vmem:[#allocation2] sm:$0x3] (%p198_p1) }
 0x391   : > { %413 = vst.msk [vmem:[%s412_s7] sm:$0x3] %vm191_vm2, %v410_v2 }
 0x392   :  { %v448_v18 = vld [vmem:[#allocation3] sm:$0x3] (%p198_p1)  ;;  %447 = vst.msk [vmem:[#allocation17] sm:$0x3] (%p198_p1), %vm191_vm2, %v446_v17 }
 0x393   :  { %450 = vst.msk [vmem:[#allocation17 + $0x2] sm:$0x3] (%p198_p1), %vm191_vm2, %v448_v18 }
 0x394   :  { %476 = dma.vmem_to_hbm [thread:$0]  (%p198_p1), %s469_s6, 64, %s471_s1, [#allocation18], %s752_s25, %s752_s25, %s753_s26  }
 0x398   :  { %v422_v4 = vld [vmem:[#allocation5] sm:$0x3]  ;;  %v423_v7 = vld [vmem:[#allocation5 + $0x2] sm:$0x3]  ;;  %v424_v20 = vld [vmem:[#allocation5 + $0x4] sm:$0x3] }
 0x399   :  { %v430_v6 = vadd.f32 %v422_v4, %v414_v3  ;;  %v431_v21 = vadd.f32 %v423_v7, %v415_v5  ;;  %v432_v22 = vadd.f32 %v424_v20, %v416_v8  ;;  %v425_v24 = vld [vmem:[#allocation5 + $0x6] sm:$0x3]  ;;  %v426_v27 = vld [vmem:[#allocation5 + $0x8] sm:$0x3]  ;;  %v427_v9 = vld [vmem:[#allocation5 + $0xa] sm:$0x3] }
 0x39a   :  { %v433_v26 = vadd.f32 %v425_v24, %v417_v23  ;;  %v434_v29 = vadd.f32 %v426_v27, %v418_v25  ;;  %v435_v11 = vadd.f32 %v427_v9, %v419_v28  ;;  %v428_v12 = vld [vmem:[#allocation5 + $0xc] sm:$0x3]  ;;  %v429_v15 = vld [vmem:[#allocation5 + $0xe] sm:$0x3] }
 0x39b   :  { %438 = vst.msk [vmem:[#allocation16] sm:$0x3] %vm191_vm2, %v430_v6  ;;  %v436_v14 = vadd.f32 %v428_v12, %v420_v10  ;;  %v437_v16 = vadd.f32 %v429_v15, %v421_v13 }
 0x39c   :  { %439 = vst.msk [vmem:[#allocation16 + $0x2] sm:$0x3] %vm191_vm2, %v431_v21 }
 0x39d   :  { %440 = vst.msk [vmem:[#allocation16 + $0x4] sm:$0x3] %vm191_vm2, %v432_v22 }
 0x39e   :  { %441 = vst.msk [vmem:[#allocation16 + $0x6] sm:$0x3] %vm191_vm2, %v433_v26 }
 0x39f   :  { %442 = vst.msk [vmem:[#allocation16 + $0x8] sm:$0x3] %vm191_vm2, %v434_v29 }
 0x3a0   :  { %443 = vst.msk [vmem:[#allocation16 + $0xa] sm:$0x3] %vm191_vm2, %v435_v11 }
 0x3a1   :  { %444 = vst.msk [vmem:[#allocation16 + $0xc] sm:$0x3] %vm191_vm2, %v436_v14 }
 0x3a2   :  { %445 = vst.msk [vmem:[#allocation16 + $0xe] sm:$0x3] %vm191_vm2, %v437_v16 }
 0x3a3   :  { %463 = dma.vmem_to_hbm [thread:$0]  %s456_s20, 256, %s458_s4, [#allocation10], %s752_s25, %s752_s25, %s753_s26  }
 0x3a4   :  { %736 = dma.done.wait [#allocation10], 256  }
 0x3a5   :  { %737 = vsyncadd [#allocation10], 4294967040 }
 0x3a6   :  { %738 = dma.done.wait [#allocation18], 64  }
 0x3a7   :  { %739 = vsyncadd [#allocation18], 4294967232 }
 0x3a8   :  { %485 = vsyncpa [#allocation9], 1 }
 0x3a9   :  { %486 = vsyncpa [#allocation12], 1 }
 0x3aa   :  { %487 = vsyncpa [#allocation15], 1 }
 0x3ab   :  { %488 = vsyncpa [#allocation10], 1 }
 0x3ac   :  { %489 = vsyncpa [#allocation18], 1 }

</bundles_post_ra>
